<compile_context>
chip_gen: v5e
topology: v5e:2x2
jax: 0.10.0
libtpu: 0.0.40
codegen_flags: <defaults>
</compile_context>

<pallas_src>
import functools

import jax
import jax.numpy as jnp
from jax.experimental import pallas as pl
from jax.experimental.pallas import tpu as pltpu


def _ipow(x, n: int):
    """x**n for a static integer n >= 1 via binary exponentiation (VALU only)."""
    assert n >= 1
    result = None
    base = x
    while n > 0:
        if n & 1:
            result = base if result is None else result * base
        n >>= 1
        if n:
            base = base * base
    return result


def _rsd_kernel(x_ref, o_ref, *, alpha, beta):
    # View is (..., N, D); compute in f32 regardless of input dtype.
    x = x_ref[...].astype(jnp.float32)

    beta_f = float(beta)
    if beta_f.is_integer() and beta_f >= 1.0:
        # sigmoid(beta * RV) == x^beta / (x^beta + (1-x)^beta).
        # Repeated squaring: ~2*log2(beta) multiplies (hide in idle VALU slots),
        # exactly one divide per element on the EUP.  No exp/log overflow.
        bi = int(beta_f)
        xp = _ipow(x, bi)
        yp = _ipow(1.0 - x, bi)
        s = xp / (xp + yp)
    else:
        # General (non-integer) beta: sigmoid(beta * -log(u)) = 1/(1 + u**beta),
        # u = (1-x)/x.  Kept exact (log + exp + divides) to hold 1e-5 tolerance.
        u = (1.0 - x) / x
        s = 1.0 / (1.0 + jnp.exp(beta_f * jnp.log(u)))

    nnrt = x - alpha * s

    # Column-wise min within each (N, D) matrix (reduce over rows), broadcast.
    nnrt = nnrt - jnp.min(nnrt, axis=-2, keepdims=True)

    # Row-wise sum normalization: (…, N, 1) exact reciprocal + broadcast multiply
    # instead of a full (…, N, D) broadcast divide.
    row_sum = jnp.sum(nnrt, axis=-1, keepdims=True)
    o_ref[...] = (nnrt * (1.0 / row_sum)).astype(o_ref.dtype)


def rsd(x, alpha=0.1, beta=20.0):
    """Pallas TPU RSD.forward for a single 2-D input x in (0, 1).

    Un-gridded: the whole (N, D) array is one VMEM block (no grid scaffolding
    for small problems).  vmem_limit_bytes is raised explicitly so the scoped
    default never silently constrains the single-block path.
    """
    assert x.ndim == 2, "RSD expects a 2-D input (N, D)"
    n, d = x.shape
    kernel = functools.partial(_rsd_kernel, alpha=float(alpha), beta=float(beta))

    needed = 2 * n * d * 4  # f32 in block + f32 out block, no pipelining
    vmem_limit = int(min(max(2 * needed + (1 << 20), 16 << 20), 64 << 20))
    # TODO(synk): 2-D inputs whose in+out blocks exceed ~64 MiB (v7x physical
    # VMEM) need a two-pass row-tiled kernel (col-min accumulate, then apply).

    return pl.pallas_call(
        kernel,
        out_shape=jax.ShapeDtypeStruct((n, d), jnp.float32),
        in_specs=[pl.BlockSpec(memory_space=pltpu.MemorySpace.VMEM)],
        out_specs=pl.BlockSpec(memory_space=pltpu.MemorySpace.VMEM),
        compiler_params=pltpu.CompilerParams(vmem_limit_bytes=vmem_limit),
    )(x)


def rsd_batched(x, alpha=0.1, beta=20.0, block_budget_bytes=3 << 20):
    """Batched RSD over x of shape (B, N, D): one pallas_call, folded batch grid.

    Each grid step processes Bt matrices at once (block (Bt, N, D)) so per-step
    overhead is amortized and DMAs are large; the batch axis is "parallel" so
    v7x shards it across its 2 TensorCores (no-op on v5e/v6e).
    """
    assert x.ndim == 3, "batched RSD expects (B, N, D)"
    b, n, d = x.shape
    kernel = functools.partial(_rsd_kernel, alpha=float(alpha), beta=float(beta))

    # Size Bt so a double-buffered in+out pipeline (~4 slabs) stays well inside
    # every generation's scoped VMEM default, while keeping >= 2 grid steps for
    # v7x megacore sharding whenever B > 1.
    bt_cap = max(1, block_budget_bytes // (n * d * 4))
    bt = max(1, min(bt_cap, pl.cdiv(b, 2))) if b > 1 else 1
    grid = (pl.cdiv(b, bt),)

    return pl.pallas_call(
        kernel,
        out_shape=jax.ShapeDtypeStruct((b, n, d), jnp.float32),
        grid=grid,
        in_specs=[pl.BlockSpec((bt, n, d), lambda i: (i, 0, 0))],
        out_specs=pl.BlockSpec((bt, n, d), lambda i: (i, 0, 0)),
        compiler_params=pltpu.CompilerParams(
            dimension_semantics=("parallel",),
            vmem_limit_bytes=32 << 20,
        ),
    )(x)


def _rsd_ref(x, alpha=0.1, beta=20.0):
    """Pure-JAX reference mirroring the PyTorch forward exactly."""
    x = x.astype(jnp.float32)
    rv = -jnp.log((1.0 - x) / x)
    nnrt = x - alpha * (1.0 / (1.0 + jnp.exp(-beta * rv)))
    nnrt = nnrt - jnp.min(nnrt, axis=0, keepdims=True)
    return nnrt / jnp.sum(nnrt, axis=1, keepdims=True)


if __name__ == "__main__":
    key = jax.random.PRNGKey(0)
    N, D = 16, 128   # D = 128 keeps the output lane-dense (one vreg wide)
    B = 8

    # RSD requires x strictly in (0, 1) so the normalization is finite.
    k2d, k3d = jax.random.split(key)
    x2 = jax.random.uniform(k2d, (N, D), dtype=jnp.float32,
                            minval=0.05, maxval=0.95)
    x3 = jax.random.uniform(k3d, (B, N, D), dtype=jnp.float32,
                            minval=0.05, maxval=0.95)

    # Single-matrix (un-gridded) path.
    out2 = jax.block_until_ready(rsd(x2, alpha=0.1, beta=20.0))
    ref2 = _rsd_ref(x2, alpha=0.1, beta=20.0)
    assert out2.shape == (N, D)
    assert jnp.allclose(out2, ref2, atol=1e-5, rtol=1e-5), "2-D mismatch vs reference"

    # Batched path (folded batch blocks, parallel grid).
    out3 = jax.block_until_ready(rsd_batched(x3, alpha=0.1, beta=20.0))
    ref3 = jax.vmap(lambda m: _rsd_ref(m, alpha=0.1, beta=20.0))(x3)
    assert out3.shape == (B, N, D)
    assert jnp.allclose(out3, ref3, atol=1e-5, rtol=1e-5), "batched mismatch vs reference"

    # Non-integer beta fallback path (exercises the log/exp branch).
    out2b = jax.block_until_ready(rsd(x2, alpha=0.1, beta=20.5))
    ref2b = _rsd_ref(x2, alpha=0.1, beta=20.5)
    assert jnp.allclose(out2b, ref2b, atol=1e-5, rtol=1e-5), "non-integer beta mismatch"

    print("KERNEL_OK")
</pallas_src>

<mosaic_0001>
module attributes {stable_mosaic.version = 11 : i64} {
  func.func @_rsd_kernel(%arg0: memref<16x128xf32, #tpu.memory_space<vmem>>, %arg1: memref<16x128xf32, #tpu.memory_space<vmem>>) attributes {dimension_semantics = [], scalar_prefetch = 0 : i64, scratch_operands = 0 : i64, tpu.core_type = #tpu.core_type<tc>} {
    %c0 = arith.constant 0 : index
    %c0_0 = arith.constant 0 : index
    %0 = vector.load %arg0[%c0, %c0_0] : memref<16x128xf32, #tpu.memory_space<vmem>>, vector<16x128xf32>
    %1 = arith.mulf %0, %0 : vector<16x128xf32>
    %2 = arith.mulf %1, %1 : vector<16x128xf32>
    %3 = arith.mulf %2, %2 : vector<16x128xf32>
    %4 = arith.mulf %3, %3 : vector<16x128xf32>
    %5 = arith.mulf %2, %4 : vector<16x128xf32>
    %cst = arith.constant 1.000000e+00 : f32
    %6 = vector.broadcast %cst : f32 to vector<16x128xf32>
    %7 = arith.subf %6, %0 : vector<16x128xf32>
    %8 = arith.mulf %7, %7 : vector<16x128xf32>
    %9 = arith.mulf %8, %8 : vector<16x128xf32>
    %10 = arith.mulf %9, %9 : vector<16x128xf32>
    %11 = arith.mulf %10, %10 : vector<16x128xf32>
    %12 = arith.mulf %9, %11 : vector<16x128xf32>
    %13 = arith.addf %5, %12 : vector<16x128xf32>
    %14 = arith.divf %5, %13 : vector<16x128xf32>
    %cst_1 = arith.constant 1.000000e-01 : f32
    %15 = vector.broadcast %cst_1 : f32 to vector<16x128xf32>
    %16 = arith.mulf %15, %14 : vector<16x128xf32>
    %17 = arith.subf %0, %16 : vector<16x128xf32>
    %cst_2 = arith.constant dense<0x7F800000> : vector<128xf32>
    %18 = vector.multi_reduction <minimumf>, %17, %cst_2 [0] : vector<16x128xf32> to vector<128xf32>
    %19 = vector.shape_cast %18 : vector<128xf32> to vector<1x128xf32>
    %20 = vector.broadcast %19 : vector<1x128xf32> to vector<16x128xf32>
    %21 = arith.subf %17, %20 : vector<16x128xf32>
    %cst_3 = arith.constant dense<0.000000e+00> : vector<16xf32>
    %22 = vector.multi_reduction <add>, %21, %cst_3 [1] : vector<16x128xf32> to vector<16xf32>
    %23 = vector.shape_cast %22 : vector<16xf32> to vector<16x1xf32>
    %cst_4 = arith.constant 1.000000e+00 : f32
    %24 = vector.broadcast %cst_4 : f32 to vector<16x1xf32>
    %25 = arith.divf %24, %23 : vector<16x1xf32>
    %26 = vector.broadcast %25 : vector<16x1xf32> to vector<16x128xf32>
    %27 = arith.mulf %21, %26 : vector<16x128xf32>
    %c0_5 = arith.constant 0 : index
    %c0_6 = arith.constant 0 : index
    %28 = vector.load %arg1[%c0_5, %c0_6] : memref<16x128xf32, #tpu.memory_space<vmem>>, vector<16x128xf32>
    tpu.vector_store %arg1[%c0_5, %c0_6], %27 {strides = array<i32>} : memref<16x128xf32, #tpu.memory_space<vmem>>, vector<16x128xf32>,
    return
  }
}

</mosaic_0001>

<bundles_post_ra>
// kernel: tpu_custom_call.1
= control target key start
LH: loop header
LB: loop body
LE: loop exit
PB: predicated region body
PF: predicated region fallthrough
CT: control target
= control target key end

     0   :  { %6 = vsyncpa [#allocation3], 0  ;;  %s241_s0 = inlined_call_operand.hbm [shape: f32[16,128], index: 0, kind: input, shape index: {}]   ;;  %s242_s1 = inlined_call_operand.hbm [shape: f32[16,128], index: 1, kind: output, shape index: {}]  }
   0x1   :  { %7 = vsyncpa [#allocation4], 0  ;;  %s12_s8 = sshll.u32 %s241_s0, 4  ;;  %s215_s9 = smov [#allocation2]   ;;  %s13_s8 = int_to_ptr.hbm [resolvable:$true] %s12_s8 }
   0x2   :  { %s14_s10 = sshll.u32 %s215_s9, 4  ;;  %s216_s11 = smov 128   ;;  %s15_s10 = int_to_ptr.vmem [resolvable:$true] %s14_s10 }
   0x3   :  { %s217_s12 = smov 8  }
   0x4   :  { %20 = dma.hbm_to_vmem [thread:$0]  %s13_s8, 256, %s15_s10, [#allocation3], %s216_s11, %s216_s11, %s217_s12  }
   0x5   :  { %211 = dma.done.wait [#allocation3], 256  }
   0x6   :  { %212 = vsyncadd [#allocation3], 4294967040  ;;  %v25_v0 = vld [vmem:[#allocation2] sm:$0xff]  ;;  %v26_v1 = vld [vmem:[#allocation2 + $0x8] sm:$0xff]  ;;  %s218_s0 = smov [#allocation5]   ;;  %s138_s16 = sshll.u32 %s242_s1, 4  ;;  %s139_s16 = int_to_ptr.hbm [resolvable:$true] %s138_s16 }
   0x7   :  { %v27_v2 = vmul.f32 %v25_v0, %v25_v0  ;;  %v28_v3 = vmul.f32 %v26_v1, %v26_v1  ;;  %v37_v4 = vsub.f32 1.0, %v25_v0  ;;  %v38_v5 = vsub.f32 1.0, %v26_v1  ;;  %s136_s13 = sshll.u32 %s218_s0, 4  ;;  %s137_s13 = int_to_ptr.vmem [resolvable:$true] %s136_s13 }
   0x9   :  { %v29_v6 = vmul.f32 %v27_v2, %v27_v2  ;;  %v30_v7 = vmul.f32 %v28_v3, %v28_v3  ;;  %v39_v8 = vmul.f32 %v37_v4, %v37_v4  ;;  %v40_v9 = vmul.f32 %v38_v5, %v38_v5 }
   0xb   :  { %v31_v10 = vmul.f32 %v29_v6, %v29_v6  ;;  %v32_v11 = vmul.f32 %v30_v7, %v30_v7  ;;  %v41_v12 = vmul.f32 %v39_v8, %v39_v8  ;;  %v42_v13 = vmul.f32 %v40_v9, %v40_v9 }
   0xd   :  { %v33_v14 = vmul.f32 %v31_v10, %v31_v10  ;;  %v34_v15 = vmul.f32 %v32_v11, %v32_v11  ;;  %v43_v16 = vmul.f32 %v41_v12, %v41_v12  ;;  %v44_v17 = vmul.f32 %v42_v13, %v42_v13 }
   0xf   :  { %v35_v18 = vmul.f32 %v33_v14, %v29_v6  ;;  %v36_v19 = vmul.f32 %v34_v15, %v30_v7  ;;  %v45_v20 = vmul.f32 %v43_v16, %v43_v16  ;;  %v46_v21 = vmul.f32 %v44_v17, %v44_v17 }
  0x11   :  { %v47_v22 = vmul.f32 %v45_v20, %v41_v12  ;;  %v48_v23 = vmul.f32 %v46_v21, %v42_v13 }
  0x13   :  { %v49_v24 = vadd.f32 %v47_v22, %v35_v18  ;;  %v50_v25 = vadd.f32 %v48_v23, %v36_v19 }
  0x15   :  { %155 = vrcp.f32 %v49_v24  ;;  %vm56_vm0 = vweird.f32 %v49_v24  ;;  %v62_v29 = vand.u32 2147483648, %v49_v24  ;;  %v60_v32 = vand.u32 2147483647, %v49_v24 }
  0x16   :  { %157 = vrcp.f32 %v50_v25  ;;  %v77_v33 = vand.u32 2147483648, %v50_v25  ;;  %vm71_vm2 = vweird.f32 %v50_v25  ;;  %v75_v35 = vand.u32 2147483647, %v50_v25 }
  0x17   :  { %v63_v37 = vor.u32 1.1754944e-38, %v62_v29  ;;  %vm61_vm5 = vcmp.eq.f32.partialorder %v60_v32, 8.507059e+37 }
  0x18   :  { %v78_v40 = vor.u32 1.1754944e-38, %v77_v33  ;;  %vm76_vm7 = vcmp.eq.f32.partialorder %v75_v35, 8.507059e+37 }
  0x1b   :  { %v156_v26 = vpop.eup %155 }
  0x1c   :  { %v158_v27 = vpop.eup %157  ;;  %v52_v28 = vmul.f32 %v156_v26, %v49_v24  ;;  %vm57_vm1 = vweird.f32 %v156_v26 }
  0x1d   :  { %v67_v30 = vmul.f32 %v158_v27, %v50_v25  ;;  %vm72_vm3 = vweird.f32 %v158_v27  ;;  %vm58_vm4 = vmor %vm56_vm0, %vm57_vm1 }
  0x1e   :  { %v53_v31 = vsub.f32 1.0, %v52_v28  ;;  %vm73_vm6 = vmor %vm71_vm2, %vm72_vm3 }
  0x1f   :  { %v68_v34 = vsub.f32 1.0, %v67_v30 }
  0x20   :  { %v54_v36 = vmul.f32 %v156_v26, %v53_v31 }
  0x21   :  { %v69_v38 = vmul.f32 %v158_v27, %v68_v34 }
  0x22   :  { %v55_v39 = vadd.f32 %v156_v26, %v54_v36 }
  0x23   :  { %v70_v41 = vadd.f32 %v158_v27, %v69_v38 }
  0x24   :  { %v59_v42 = vsel %vm58_vm4, %v156_v26, %v55_v39 }
  0x25   :  { %v64_v43 = vsel %vm61_vm5, %v63_v37, %v59_v42  ;;  %v74_v44 = vsel %vm73_vm6, %v158_v27, %v70_v41 }
  0x26   :  { %v65_v45 = vmul.f32 %v64_v43, %v35_v18  ;;  %v79_v46 = vsel %vm76_vm7, %v78_v40, %v74_v44 }
  0x27   :  { %v80_v47 = vmul.f32 %v79_v46, %v36_v19 }
  0x28   :  { %v81_v48 = vmul.f32 0.1, %v65_v45 }
  0x29   :  { %v82_v49 = vmul.f32 0.1, %v80_v47 }
  0x2a   :  { %v83_v50 = vsub.f32 %v25_v0, %v81_v48 }
  0x2b   :  { %v84_v51 = vsub.f32 %v26_v1, %v82_v49 }
  0x2d   :  { %v85_v52 = vmin.f32 %v83_v50, %v84_v51 }
  0x2f   :  { %v86_v53 = vrot.slane %v85_v52, 4 }
  0x31   :  { %v87_v54 = vmin.f32 %v85_v52, %v86_v53 }
  0x33   :  { %v88_v55 = vrot.slane %v87_v54, 2 }
  0x35   :  { %v89_v56 = vmin.f32 %v87_v54, %v88_v55 }
  0x37   :  { %v90_v57 = vrot.slane %v89_v56, 1 }
  0x39   :  { %v91_v58 = vmin.f32 %v89_v56, %v90_v57 }
  0x3b   :  { %v92_v59 = vsub.f32 %v83_v50, %v91_v58  ;;  %v93_v60 = vsub.f32 %v84_v51, %v91_v58 }
  0x3d   :  { %94 = vadd.xlane.f32.xlu0 %v92_v59 }
  0x45   :  { %96 = vadd.xlane.f32.xlu0 %v93_v60 }
  0xb0   :  { %v95_v61 = vpop.xlane.xlu0 %94 }
  0xb1   :  { %159 = vrcp.f32 %v95_v61  ;;  %v109_v0 = vand.u32 2147483648, %v95_v61  ;;  %v107_v4 = vand.u32 2147483647, %v95_v61  ;;  %vm103_vm9 = vweird.f32 %v95_v61 }
  0xb3   :  { %v110_v7 = vor.u32 1.1754944e-38, %v109_v0  ;;  %vm108_vm11 = vcmp.eq.f32.partialorder %v107_v4, 8.507059e+37 }
  0xb7   :  { %v160_v62 = vpop.eup %159 }
  0xb8   :  { %v99_v63 = vmul.f32 %v160_v62, %v95_v61  ;;  %v97_v2 = vpop.xlane.xlu0 %96  ;;  %vm104_vm8 = vweird.f32 %v160_v62 }
  0xb9   :  { %161 = vrcp.f32 %v97_v2  ;;  %vm105_vm10 = vmor %vm103_vm9, %vm104_vm8  ;;  %v124_v13 = vand.u32 2147483648, %v97_v2  ;;  %v122_v15 = vand.u32 2147483647, %v97_v2  ;;  %vm118_vm13 = vweird.f32 %v97_v2 }
  0xba   :  { %v100_v3 = vsub.f32 1.0, %v99_v63 }
  0xbb   :  { %v125_v17 = vor.u32 1.1754944e-38, %v124_v13  ;;  %vm123_vm15 = vcmp.eq.f32.partialorder %v122_v15, 8.507059e+37 }
  0xbc   :  { %v101_v1 = vmul.f32 %v160_v62, %v100_v3 }
  0xbe   :  { %v102_v5 = vadd.f32 %v160_v62, %v101_v1 }
  0xbf   :  { %v162_v6 = vpop.eup %161 }
  0xc0   :  { %v114_v8 = vmul.f32 %v162_v6, %v97_v2  ;;  %v106_v9 = vsel %vm105_vm10, %v160_v62, %v102_v5  ;;  %vm119_vm12 = vweird.f32 %v162_v6 }
  0xc1   :  { %v111_v10 = vsel %vm108_vm11, %v110_v7, %v106_v9  ;;  %vm120_vm14 = vmor %vm118_vm13, %vm119_vm12 }
  0xc2   :  { %v115_v11 = vsub.f32 1.0, %v114_v8  ;;  %v128_v12 = vmul.f32 %v111_v10, %v92_v59 }
  0xc4   :  { %v116_v14 = vmul.f32 %v162_v6, %v115_v11  ;;  %130 = vst [vmem:[#allocation5] sm:$0xff] %v128_v12 }
  0xc6   :  { %v117_v16 = vadd.f32 %v162_v6, %v116_v14 }
  0xc8   :  { %v121_v18 = vsel %vm120_vm14, %v162_v6, %v117_v16 }
  0xc9   :  { %v126_v19 = vsel %vm123_vm15, %v125_v17, %v121_v18 }
  0xca   :  { %v129_v20 = vmul.f32 %v126_v19, %v93_v60 }
  0xcc   :  { %131 = vst [vmem:[#allocation5 + $0x8] sm:$0xff] %v129_v20 }
  0xcd   :  { %144 = dma.vmem_to_hbm [thread:$0]  %s137_s13, 256, %s139_s16, [#allocation4], %s216_s11, %s216_s11, %s217_s12  }
  0xce   :  { %213 = dma.done.wait [#allocation4], 256  }
  0xcf   :  { %214 = vsyncadd [#allocation4], 4294967040 }
  0xd0   :  { %149 = vsyncpa [#allocation3], 1 }
  0xd1   :  { %150 = vsyncpa [#allocation4], 1 }

</bundles_post_ra>
